<compile_context>
chip_gen: v6e
topology: v6e:2x2x1
jax: 0.10.0
libtpu: 0.0.40
codegen_flags: <defaults>
</compile_context>

<pallas_src>
import functools

import jax
import jax.numpy as jnp
from jax import lax
from jax.experimental import pallas as pl
from jax.experimental.pallas import tpu as pltpu


def _round_up(n, m):
    return ((n + m - 1) // m) * m


# ----------------------------- Pallas kernel --------------------------------
def _fused_forward_kernel(idx_ref, a_ref, w2_ref, bias_ref, o_ref, *, n_slots, band):
    # idx_ref:  (TB, 8)            int32   packed [friends | enemies | map | -1]
    # a_ref:    (n_slots*band, H)  bf16    per-slot banded (embedding @ fc1-slice)
    # w2_ref:   (H, OUT)           bf16    fc2 weight (padded, (in,out) layout)
    # bias_ref: (2, max(H, OUT))   f32     row0 = b1 (padded), row1 = b2 (padded)
    # o_ref:    (TB, OUT)          f32     padded logits
    tb = idx_ref.shape[0]
    h_pad = a_ref.shape[1]
    out_pad = w2_ref.shape[1]

    idx = idx_ref[...]                                      # (tb, 8) int32
    # Tiny column iota, re-broadcast per band compare (never materialized wide).
    cols = lax.broadcasted_iota(jnp.int32, (1, band), 1)

    bias = bias_ref[...]
    b1 = bias[0:1, :h_pad]
    b2 = bias[1:2, :out_pad]

    # Streamed fc1: per-slot 128-lane one-hot band (bf16) -> MXU accumulate (f32).
    # Each band owns its own 128 rows of A_all, so no offsets and no adds on the
    # one-hot — just a compare, a cast, and a K=128 matmul per slot.
    acc = jnp.zeros((tb, h_pad), jnp.float32)
    for s in range(n_slots):
        oh = (idx[:, s:s + 1] == cols).astype(a_ref.dtype)  # (tb, band) bf16
        acc = acc + jnp.dot(oh, a_ref[pl.ds(s * band, band), :],
                            preferred_element_type=jnp.float32)

    h = jnp.maximum(acc + b1, 0.0)                          # bias + ReLU in f32

    # fc2, bf16 MXU, f32 accumulation.
    y = jnp.dot(h.astype(w2_ref.dtype), w2_ref[...],
                preferred_element_type=jnp.float32)
    o_ref[...] = (y + b2).astype(o_ref.dtype)


def fused_forward(idx_packed, a_all, w2_pad, bias_pack, *, n_slots, band):
    B, ncols = idx_packed.shape
    k_in, h_pad = a_all.shape
    out_pad = w2_pad.shape[1]

    # Batch tiling: one tile for small B; >= 2 tiles once B > 512 so the
    # "parallel" batch axis can shard across both TensorCores on v7x.
    if B <= 512:
        tb = _round_up(B, 8)
    else:
        tb = min(1024, _round_up((B + 1) // 2, 8))
    b_pad = _round_up(B, tb)
    if b_pad != B:
        idx_packed = jnp.pad(idx_packed, ((0, b_pad - B), (0, 0)))
    grid = (b_pad // tb,)

    kernel = functools.partial(_fused_forward_kernel, n_slots=n_slots, band=band)

    flops = 2 * b_pad * (k_in * h_pad + h_pad * out_pad)
    bytes_accessed = (
        idx_packed.size * 4
        + a_all.size * a_all.dtype.itemsize
        + w2_pad.size * w2_pad.dtype.itemsize
        + bias_pack.size * 4
        + b_pad * out_pad * 4
    )

    return pl.pallas_call(
        kernel,
        out_shape=jax.ShapeDtypeStruct((b_pad, out_pad), jnp.float32),
        grid=grid,
        in_specs=[
            pl.BlockSpec((tb, ncols), lambda i: (i, 0)),       # packed indices
            pl.BlockSpec((k_in, h_pad), lambda i: (0, 0)),     # A_all   (resident)
            pl.BlockSpec((h_pad, out_pad), lambda i: (0, 0)),  # W2      (resident)
            pl.BlockSpec(bias_pack.shape, lambda i: (0, 0)),   # biases  (resident)
        ],
        out_specs=pl.BlockSpec((tb, out_pad), lambda i: (i, 0)),
        compiler_params=pltpu.CompilerParams(
            dimension_semantics=("parallel",)),
        cost_estimate=pl.CostEstimate(
            flops=int(flops), transcendentals=0, bytes_accessed=int(bytes_accessed)),
    )(idx_packed, a_all, w2_pad, bias_pack)


# ----------------------------- Model wrapper --------------------------------
class BrawlerPredictionModelPallas:
    def __init__(self, num_brawlers, num_maps, emb_dim=16, hidden_dim=64,
                 pad_idx=0, num_friends=3, num_enemies=3, key=None):
        self.num_brawlers = num_brawlers
        self.num_maps = num_maps
        self.emb_dim = emb_dim
        self.hidden_dim = hidden_dim
        self.pad_idx = pad_idx
        self.num_friends = num_friends
        self.num_enemies = num_enemies

        input_dim = (num_friends + num_enemies + 1) * emb_dim

        if key is None:
            key = jax.random.PRNGKey(0)
        k_be, k_me, k_w1, k_b1, k_w2, k_b2 = jax.random.split(key, 6)

        # Original-form parameters (f32), synthetic deterministic init.
        brawler_emb = jax.random.normal(k_be, (num_brawlers, emb_dim), jnp.float32)
        brawler_emb = brawler_emb.at[pad_idx].set(0.0)     # nn.Embedding padding_idx
        self.brawler_embedding = brawler_emb
        self.map_embedding = jax.random.normal(k_me, (num_maps, emb_dim), jnp.float32)

        s1 = 1.0 / float(input_dim) ** 0.5
        s2 = 1.0 / float(hidden_dim) ** 0.5
        # Linear params stored as (in, out): y = x @ W + b  (== torch x @ W.T + b)
        self.w1 = jax.random.uniform(k_w1, (input_dim, hidden_dim), jnp.float32, -s1, s1)
        self.b1 = jax.random.uniform(k_b1, (1, hidden_dim), jnp.float32, -s1, s1)
        self.w2 = jax.random.uniform(k_w2, (hidden_dim, num_brawlers), jnp.float32, -s2, s2)
        self.b2 = jax.random.uniform(k_b2, (1, num_brawlers), jnp.float32, -s2, s2)

        self._build_kernel_params()

    def _build_kernel_params(self):
        nb, nm, e = self.num_brawlers, self.num_maps, self.emb_dim
        nf, ne, h = self.num_friends, self.num_enemies, self.hidden_dim
        n_slots = nf + ne + 1

        # Each slot owns a lane-aligned band of A_all; indices beyond the real
        # table size hit zero rows (silently dropped — original torch would error).
        band = _round_up(max(nb, nm), 128)
        self.band = band
        self.n_slots = n_slots
        self.h_pad = _round_up(h, 128)
        self.out_pad = _round_up(nb, 128)

        hp = jax.lax.Precision.HIGHEST
        blocks = []
        for s in range(nf + ne):                               # brawler slots
            blk = jnp.dot(self.brawler_embedding,
                          self.w1[s * e:(s + 1) * e, :], precision=hp)
            blocks.append(jnp.pad(blk, ((0, band - nb), (0, self.h_pad - h))))
        blk = jnp.dot(self.map_embedding,                      # map slot
                      self.w1[(nf + ne) * e:(nf + ne + 1) * e, :], precision=hp)
        blocks.append(jnp.pad(blk, ((0, band - nm), (0, self.h_pad - h))))
        self.a_all = jnp.concatenate(blocks, axis=0).astype(jnp.bfloat16)  # (896,128)

        w2p = jnp.pad(self.w2, ((0, self.h_pad - h), (0, self.out_pad - nb)))
        self.w2_pad = w2p.astype(jnp.bfloat16)                             # (128,128)

        bp = max(self.h_pad, self.out_pad)
        b1p = jnp.pad(self.b1, ((0, 0), (0, bp - h)))
        b2p = jnp.pad(self.b2, ((0, 0), (0, bp - nb)))
        self.bias_pack = jnp.concatenate([b1p, b2p], axis=0)               # (2,128) f32

    def __call__(self, friends, enemies, map_idx):
        B = friends.shape[0]
        # Pack all indices into one int32 input (column 7 is padding, never read).
        idx = jnp.concatenate(
            [friends.astype(jnp.int32), enemies.astype(jnp.int32),
             map_idx.astype(jnp.int32),
             jnp.full((B, 1), -1, jnp.int32)], axis=1)          # (B, 8)
        out = fused_forward(idx, self.a_all, self.w2_pad, self.bias_pack,
                            n_slots=self.n_slots, band=self.band)
        # Slice padded lanes / padded batch rows back to the real logits.
        # TODO(synk): for large-batch serving, return the padded slab and slice at
        # the consumer to avoid this extra HBM copy.
        return out[:B, :self.num_brawlers]


# ----------------------------- References ------------------------------------
def reference_forward(model, friends, enemies, map_idx):
    """Original-module semantics: gather -> concat -> fc1 -> ReLU -> fc2 (f32)."""
    hp = jax.lax.Precision.HIGHEST
    B = friends.shape[0]
    ef = jnp.take(model.brawler_embedding, friends, axis=0).reshape(B, -1)
    ee = jnp.take(model.brawler_embedding, enemies, axis=0).reshape(B, -1)
    em = jnp.take(model.map_embedding, map_idx, axis=0)[:, 0, :]
    x = jnp.concatenate([ef, ee, em], axis=1)
    h = jnp.maximum(jnp.dot(x, model.w1, precision=hp) + model.b1, 0.0)
    return jnp.dot(h, model.w2, precision=hp) + model.b2


def reference_forward_kernel_math(model, friends, enemies, map_idx):
    """Exact mirror of the kernel's banded bf16-weight / f32-accumulation math."""
    hp = jax.lax.Precision.HIGHEST
    band = model.band
    B = friends.shape[0]
    idx = jnp.concatenate([friends, enemies, map_idx], axis=1).astype(jnp.int32)
    cols = jnp.arange(band, dtype=jnp.int32)[None, :]
    a_f32 = model.a_all.astype(jnp.float32)
    acc = jnp.zeros((B, model.h_pad), jnp.float32)
    for s in range(model.n_slots):
        oh = (idx[:, s:s + 1] == cols).astype(jnp.float32)
        acc = acc + jnp.dot(oh, a_f32[s * band:(s + 1) * band, :], precision=hp)
    h = jnp.maximum(acc + model.bias_pack[0:1, :model.h_pad], 0.0)
    h = h.astype(jnp.bfloat16).astype(jnp.float32)
    y = jnp.dot(h, model.w2_pad.astype(jnp.float32), precision=hp) \
        + model.bias_pack[1:2, :model.out_pad]
    return y[:, :model.num_brawlers]


# ----------------------------- Demo / check ----------------------------------
if __name__ == "__main__":
    num_brawlers = 80
    num_maps = 16
    batch = 8

    key = jax.random.PRNGKey(0)
    k_model, k_f, k_e, k_m = jax.random.split(key, 4)

    model = BrawlerPredictionModelPallas(num_brawlers, num_maps, key=k_model)

    friends = jax.random.randint(k_f, (batch, 3), 0, num_brawlers, dtype=jnp.int32)
    enemies = jax.random.randint(k_e, (batch, 3), 0, num_brawlers, dtype=jnp.int32)
    map_idx = jax.random.randint(k_m, (batch, 1), 0, num_maps, dtype=jnp.int32)

    logits = jax.block_until_ready(model(friends, enemies, map_idx))
    assert logits.shape == (batch, num_brawlers)

    # Tight check: kernel vs an exact JAX mirror of its bf16/f32-acc math.
    tight = reference_forward_kernel_math(model, friends, enemies, map_idx)
    assert jnp.allclose(logits, tight, atol=1e-3, rtol=1e-3), \
        float(jnp.max(jnp.abs(logits - tight)))

    # Semantic check: kernel vs the original fp32 module forward
    # (slack covers only bf16 weight quantization).
    ref = reference_forward(model, friends, enemies, map_idx)
    assert jnp.allclose(logits, ref, atol=2e-2, rtol=2e-2), \
        float(jnp.max(jnp.abs(logits - ref)))

    print("KERNEL_OK")
</pallas_src>

<mosaic_0001>
module attributes {stable_mosaic.version = 11 : i64} {
  func.func @_fused_forward_kernel(%arg0: i32, %arg1: memref<8x8xi32, #tpu.memory_space<vmem>>, %arg2: memref<896x128xbf16, #tpu.memory_space<vmem>>, %arg3: memref<128x128xbf16, #tpu.memory_space<vmem>>, %arg4: memref<2x128xf32, #tpu.memory_space<vmem>>, %arg5: memref<8x128xf32, #tpu.memory_space<vmem>>) attributes {dimension_semantics = [#tpu.dimension_semantics<parallel>], iteration_bounds = array<i64: 1>, scalar_prefetch = 0 : i64, scratch_operands = 0 : i64, tpu.core_type = #tpu.core_type<tc>, window_params = [{transform_indices = @transform_0, window_bounds = array<i64: 8, 8>}, {pipeline_mode = #tpu.pipeline_mode<synchronous>, transform_indices = @transform_1, window_bounds = array<i64: 896, 128>}, {pipeline_mode = #tpu.pipeline_mode<synchronous>, transform_indices = @transform_2, window_bounds = array<i64: 128, 128>}, {pipeline_mode = #tpu.pipeline_mode<synchronous>, transform_indices = @transform_3, window_bounds = array<i64: 2, 128>}, {transform_indices = @transform_4, window_bounds = array<i64: 8, 128>}]} {
    %c0 = arith.constant 0 : index
    %c0_0 = arith.constant 0 : index
    %0 = vector.load %arg1[%c0, %c0_0] : memref<8x8xi32, #tpu.memory_space<vmem>>, vector<8x8xi32>
    %1 = tpu.iota {dimensions = array<i32: 1>} : vector<1x128xi32>
    %c0_1 = arith.constant 0 : index
    %c0_2 = arith.constant 0 : index
    %2 = vector.load %arg4[%c0_1, %c0_2] : memref<2x128xf32, #tpu.memory_space<vmem>>, vector<2x128xf32>
    %3 = vector.extract_strided_slice %2 {offsets = [0, 0], sizes = [1, 128], strides = [1, 1]} : vector<2x128xf32> to vector<1x128xf32>
    %4 = vector.extract_strided_slice %2 {offsets = [1, 0], sizes = [1, 128], strides = [1, 1]} : vector<2x128xf32> to vector<1x128xf32>
    %cst = arith.constant 0.000000e+00 : f32
    %5 = vector.broadcast %cst : f32 to vector<8x128xf32>
    %6 = vector.extract_strided_slice %0 {offsets = [0, 0], sizes = [8, 1], strides = [1, 1]} : vector<8x8xi32> to vector<8x1xi32>
    %7 = vector.broadcast %6 : vector<8x1xi32> to vector<8x128xi32>
    %8 = vector.broadcast %1 : vector<1x128xi32> to vector<8x128xi32>
    %9 = arith.cmpi eq, %7, %8 : vector<8x128xi32>
    %10 = arith.extui %9 : vector<8x128xi1> to vector<8x128xi32>
    %11 = arith.sitofp %10 : vector<8x128xi32> to vector<8x128xf32>
    %12 = arith.truncf %11 : vector<8x128xf32> to vector<8x128xbf16>
    %c0_3 = arith.constant 0 : index
    %c0_4 = arith.constant 0 : index
    %13 = vector.load %arg2[%c0_3, %c0_4] : memref<896x128xbf16, #tpu.memory_space<vmem>>, vector<128x128xbf16>
    %cst_5 = arith.constant dense<0.000000e+00> : vector<8x128xf32>
    %14 = tpu.matmul %12, %13, %cst_5 {dimension_numbers = #tpu.dot_dimension_numbers<[1], [0], [0], [1], [0, 0, 1, 1], [], []>} : vector<8x128xbf16>, vector<128x128xbf16>, vector<8x128xf32> -> vector<8x128xf32>
    %15 = arith.addf %5, %14 : vector<8x128xf32>
    %16 = vector.extract_strided_slice %0 {offsets = [0, 1], sizes = [8, 1], strides = [1, 1]} : vector<8x8xi32> to vector<8x1xi32>
    %17 = vector.broadcast %16 : vector<8x1xi32> to vector<8x128xi32>
    %18 = vector.broadcast %1 : vector<1x128xi32> to vector<8x128xi32>
    %19 = arith.cmpi eq, %17, %18 : vector<8x128xi32>
    %20 = arith.extui %19 : vector<8x128xi1> to vector<8x128xi32>
    %21 = arith.sitofp %20 : vector<8x128xi32> to vector<8x128xf32>
    %22 = arith.truncf %21 : vector<8x128xf32> to vector<8x128xbf16>
    %c128 = arith.constant 128 : index
    %c0_6 = arith.constant 0 : index
    %23 = vector.load %arg2[%c128, %c0_6] : memref<896x128xbf16, #tpu.memory_space<vmem>>, vector<128x128xbf16>
    %cst_7 = arith.constant dense<0.000000e+00> : vector<8x128xf32>
    %24 = tpu.matmul %22, %23, %cst_7 {dimension_numbers = #tpu.dot_dimension_numbers<[1], [0], [0], [1], [0, 0, 1, 1], [], []>} : vector<8x128xbf16>, vector<128x128xbf16>, vector<8x128xf32> -> vector<8x128xf32>
    %25 = arith.addf %15, %24 : vector<8x128xf32>
    %26 = vector.extract_strided_slice %0 {offsets = [0, 2], sizes = [8, 1], strides = [1, 1]} : vector<8x8xi32> to vector<8x1xi32>
    %27 = vector.broadcast %26 : vector<8x1xi32> to vector<8x128xi32>
    %28 = vector.broadcast %1 : vector<1x128xi32> to vector<8x128xi32>
    %29 = arith.cmpi eq, %27, %28 : vector<8x128xi32>
    %30 = arith.extui %29 : vector<8x128xi1> to vector<8x128xi32>
    %31 = arith.sitofp %30 : vector<8x128xi32> to vector<8x128xf32>
    %32 = arith.truncf %31 : vector<8x128xf32> to vector<8x128xbf16>
    %c256 = arith.constant 256 : index
    %c0_8 = arith.constant 0 : index
    %33 = vector.load %arg2[%c256, %c0_8] : memref<896x128xbf16, #tpu.memory_space<vmem>>, vector<128x128xbf16>
    %cst_9 = arith.constant dense<0.000000e+00> : vector<8x128xf32>
    %34 = tpu.matmul %32, %33, %cst_9 {dimension_numbers = #tpu.dot_dimension_numbers<[1], [0], [0], [1], [0, 0, 1, 1], [], []>} : vector<8x128xbf16>, vector<128x128xbf16>, vector<8x128xf32> -> vector<8x128xf32>
    %35 = arith.addf %25, %34 : vector<8x128xf32>
    %36 = vector.extract_strided_slice %0 {offsets = [0, 3], sizes = [8, 1], strides = [1, 1]} : vector<8x8xi32> to vector<8x1xi32>
    %37 = vector.broadcast %36 : vector<8x1xi32> to vector<8x128xi32>
    %38 = vector.broadcast %1 : vector<1x128xi32> to vector<8x128xi32>
    %39 = arith.cmpi eq, %37, %38 : vector<8x128xi32>
    %40 = arith.extui %39 : vector<8x128xi1> to vector<8x128xi32>
    %41 = arith.sitofp %40 : vector<8x128xi32> to vector<8x128xf32>
    %42 = arith.truncf %41 : vector<8x128xf32> to vector<8x128xbf16>
    %c384 = arith.constant 384 : index
    %c0_10 = arith.constant 0 : index
    %43 = vector.load %arg2[%c384, %c0_10] : memref<896x128xbf16, #tpu.memory_space<vmem>>, vector<128x128xbf16>
    %cst_11 = arith.constant dense<0.000000e+00> : vector<8x128xf32>
    %44 = tpu.matmul %42, %43, %cst_11 {dimension_numbers = #tpu.dot_dimension_numbers<[1], [0], [0], [1], [0, 0, 1, 1], [], []>} : vector<8x128xbf16>, vector<128x128xbf16>, vector<8x128xf32> -> vector<8x128xf32>
    %45 = arith.addf %35, %44 : vector<8x128xf32>
    %46 = vector.extract_strided_slice %0 {offsets = [0, 4], sizes = [8, 1], strides = [1, 1]} : vector<8x8xi32> to vector<8x1xi32>
    %47 = vector.broadcast %46 : vector<8x1xi32> to vector<8x128xi32>
    %48 = vector.broadcast %1 : vector<1x128xi32> to vector<8x128xi32>
    %49 = arith.cmpi eq, %47, %48 : vector<8x128xi32>
    %50 = arith.extui %49 : vector<8x128xi1> to vector<8x128xi32>
    %51 = arith.sitofp %50 : vector<8x128xi32> to vector<8x128xf32>
    %52 = arith.truncf %51 : vector<8x128xf32> to vector<8x128xbf16>
    %c512 = arith.constant 512 : index
    %c0_12 = arith.constant 0 : index
    %53 = vector.load %arg2[%c512, %c0_12] : memref<896x128xbf16, #tpu.memory_space<vmem>>, vector<128x128xbf16>
    %cst_13 = arith.constant dense<0.000000e+00> : vector<8x128xf32>
    %54 = tpu.matmul %52, %53, %cst_13 {dimension_numbers = #tpu.dot_dimension_numbers<[1], [0], [0], [1], [0, 0, 1, 1], [], []>} : vector<8x128xbf16>, vector<128x128xbf16>, vector<8x128xf32> -> vector<8x128xf32>
    %55 = arith.addf %45, %54 : vector<8x128xf32>
    %56 = vector.extract_strided_slice %0 {offsets = [0, 5], sizes = [8, 1], strides = [1, 1]} : vector<8x8xi32> to vector<8x1xi32>
    %57 = vector.broadcast %56 : vector<8x1xi32> to vector<8x128xi32>
    %58 = vector.broadcast %1 : vector<1x128xi32> to vector<8x128xi32>
    %59 = arith.cmpi eq, %57, %58 : vector<8x128xi32>
    %60 = arith.extui %59 : vector<8x128xi1> to vector<8x128xi32>
    %61 = arith.sitofp %60 : vector<8x128xi32> to vector<8x128xf32>
    %62 = arith.truncf %61 : vector<8x128xf32> to vector<8x128xbf16>
    %c640 = arith.constant 640 : index
    %c0_14 = arith.constant 0 : index
    %63 = vector.load %arg2[%c640, %c0_14] : memref<896x128xbf16, #tpu.memory_space<vmem>>, vector<128x128xbf16>
    %cst_15 = arith.constant dense<0.000000e+00> : vector<8x128xf32>
    %64 = tpu.matmul %62, %63, %cst_15 {dimension_numbers = #tpu.dot_dimension_numbers<[1], [0], [0], [1], [0, 0, 1, 1], [], []>} : vector<8x128xbf16>, vector<128x128xbf16>, vector<8x128xf32> -> vector<8x128xf32>
    %65 = arith.addf %55, %64 : vector<8x128xf32>
    %66 = vector.extract_strided_slice %0 {offsets = [0, 6], sizes = [8, 1], strides = [1, 1]} : vector<8x8xi32> to vector<8x1xi32>
    %67 = vector.broadcast %66 : vector<8x1xi32> to vector<8x128xi32>
    %68 = vector.broadcast %1 : vector<1x128xi32> to vector<8x128xi32>
    %69 = arith.cmpi eq, %67, %68 : vector<8x128xi32>
    %70 = arith.extui %69 : vector<8x128xi1> to vector<8x128xi32>
    %71 = arith.sitofp %70 : vector<8x128xi32> to vector<8x128xf32>
    %72 = arith.truncf %71 : vector<8x128xf32> to vector<8x128xbf16>
    %c768 = arith.constant 768 : index
    %c0_16 = arith.constant 0 : index
    %73 = vector.load %arg2[%c768, %c0_16] : memref<896x128xbf16, #tpu.memory_space<vmem>>, vector<128x128xbf16>
    %cst_17 = arith.constant dense<0.000000e+00> : vector<8x128xf32>
    %74 = tpu.matmul %72, %73, %cst_17 {dimension_numbers = #tpu.dot_dimension_numbers<[1], [0], [0], [1], [0, 0, 1, 1], [], []>} : vector<8x128xbf16>, vector<128x128xbf16>, vector<8x128xf32> -> vector<8x128xf32>
    %75 = arith.addf %65, %74 : vector<8x128xf32>
    %76 = vector.broadcast %3 : vector<1x128xf32> to vector<8x128xf32>
    %77 = arith.addf %75, %76 : vector<8x128xf32>
    %cst_18 = arith.constant 0.000000e+00 : f32
    %78 = vector.broadcast %cst_18 : f32 to vector<8x128xf32>
    %79 = arith.maximumf %77, %78 : vector<8x128xf32>
    %80 = arith.truncf %79 : vector<8x128xf32> to vector<8x128xbf16>
    %c0_19 = arith.constant 0 : index
    %c0_20 = arith.constant 0 : index
    %81 = vector.load %arg3[%c0_19, %c0_20] : memref<128x128xbf16, #tpu.memory_space<vmem>>, vector<128x128xbf16>
    %cst_21 = arith.constant dense<0.000000e+00> : vector<8x128xf32>
    %82 = tpu.matmul %80, %81, %cst_21 {dimension_numbers = #tpu.dot_dimension_numbers<[1], [0], [0], [1], [0, 0, 1, 1], [], []>} : vector<8x128xbf16>, vector<128x128xbf16>, vector<8x128xf32> -> vector<8x128xf32>
    %83 = vector.broadcast %4 : vector<1x128xf32> to vector<8x128xf32>
    %84 = arith.addf %82, %83 : vector<8x128xf32>
    %c0_22 = arith.constant 0 : index
    %c0_23 = arith.constant 0 : index
    %85 = vector.load %arg5[%c0_22, %c0_23] : memref<8x128xf32, #tpu.memory_space<vmem>>, vector<8x128xf32>
    tpu.vector_store %arg5[%c0_22, %c0_23], %84 {strides = array<i32>} : memref<8x128xf32, #tpu.memory_space<vmem>>, vector<8x128xf32>,
    return
  }
  func.func @transform_0(%arg0: i32) -> (i32, i32) {
    %c0_i32 = arith.constant 0 : i32
    %c0_i32_0 = arith.constant 0 : i32
    return %arg0, %c0_i32 : i32, i32
  }
  func.func @transform_1(%arg0: i32) -> (i32, i32) {
    %c0_i32 = arith.constant 0 : i32
    %c0_i32_0 = arith.constant 0 : i32
    %c0_i32_1 = arith.constant 0 : i32
    return %c0_i32, %c0_i32_0 : i32, i32
  }
  func.func @transform_2(%arg0: i32) -> (i32, i32) {
    %c0_i32 = arith.constant 0 : i32
    %c0_i32_0 = arith.constant 0 : i32
    %c0_i32_1 = arith.constant 0 : i32
    return %c0_i32, %c0_i32_0 : i32, i32
  }
  func.func @transform_3(%arg0: i32) -> (i32, i32) {
    %c0_i32 = arith.constant 0 : i32
    %c0_i32_0 = arith.constant 0 : i32
    %c0_i32_1 = arith.constant 0 : i32
    return %c0_i32, %c0_i32_0 : i32, i32
  }
  func.func @transform_4(%arg0: i32) -> (i32, i32) {
    %c0_i32 = arith.constant 0 : i32
    %c0_i32_0 = arith.constant 0 : i32
    return %arg0, %c0_i32 : i32, i32
  }
}

</mosaic_0001>

<bundles_post_ra>
// kernel: tpu_custom_call.1
= control target key start
LH: loop header
LB: loop body
LE: loop exit
PB: predicated region body
PF: predicated region fallthrough
CT: control target
= control target key end

     0   :  { %9 = vsyncpa [#allocation3], 0  ;;  %s1621_s0 = inlined_call_operand.hbm [shape: s32[8,8], index: 0, kind: input, shape index: {}]   ;;  %s1622_s1 = inlined_call_operand.hbm [shape: bf16[896,128], index: 1, kind: input, shape index: {}]   ;;  %s1623_s2 = inlined_call_operand.hbm [shape: bf16[128,128], index: 2, kind: input, shape index: {}]   ;;  %s1624_s3 = inlined_call_operand.vmem [shape: f32[2,128], index: 3, kind: input, shape index: {}]   ;;  %s1625_s4 = inlined_call_operand.hbm [shape: f32[8,128], index: 4, kind: output, shape index: {}]  }
   0x1   :  { %10 = vsyncpa [#allocation6], 0 }
   0x2   :  { %11 = vsyncpa [#allocation4], 0  ;;  %s1467_s15 = smov [#allocation5]  }
   0x3   :  { %s27_s16 = sshll.u32 %s1467_s15, 4  ;;  %s28_s16 = int_to_ptr.vmem [resolvable:$true] %s27_s16 }
   0x4   :  { %s1389_s17 = scalar_lea.vmem %s28_s16, 7168  ;;  %p1394_p1 = scmp.lt.s32.totalorder %s28_s16, %s28_s16 }
   0x5   :  { %p1390_p0 = scmp.ne.s32.totalorder %s28_s16, %s1389_s17  ;;  %p1395_p2 = scmp.lt.s32.totalorder %s1389_s17, %s1389_s17 }
   0x7   :  { %p1396_p3 = por %p1395_p2, %p1394_p1 }
   0x9   :  { %p1397_p4 = pnand %p1396_p3, %p1390_p0 }
   0xb   :  { %1400 = shalt.err (!%p1397_p4)
}
   0xc   :  { %s1468_s18 = smov 64   ;;  %s1469_s19 = smov 4  }
   0xd   :  { %33 = dma.hbm_to_vmem [thread:$0]  %s1622_s1, 7168, %s28_s16, [#allocation6], %s1468_s18, %s1468_s18, %s1469_s19  }
   0xe   :  { %s1470_s22 = smov [#allocation2]   ;;  %s1471_s24 = smov [#allocation7]  }
   0xf   :  { %s18_s23 = sshll.u32 %s1470_s22, 4  ;;  %s39_s25 = sshll.u32 %s1471_s24, 4  ;;  %s19_s23 = int_to_ptr.vmem [resolvable:$true] %s18_s23  ;;  %s40_s25 = int_to_ptr.vmem [resolvable:$true] %s39_s25 }
  0x10   :  { %s1409_s26 = scalar_lea.vmem %s19_s23, 128  ;;  %p1414_p6 = scmp.lt.s32.totalorder %s19_s23, %s19_s23 }
  0x11   :  { %p1410_p5 = scmp.ne.s32.totalorder %s19_s23, %s1409_s26  ;;  %p1415_p7 = scmp.lt.s32.totalorder %s1409_s26, %s1409_s26 }
  0x13   :  { %p1416_p8 = por %p1415_p7, %p1414_p6 }
  0x15   :  { %p1417_p9 = pnand %p1416_p8, %p1410_p5 }
  0x17   :  { %1420 = shalt.err (!%p1417_p9)
}
  0x18   :  { %21 = dma.hbm_to_vmem [thread:$0]  %s1621_s0, 128, %s19_s23, [#allocation3]  }
  0x19   :  { %s1429_s29 = scalar_lea.vmem %s40_s25, 1024  ;;  %p1434_p11 = scmp.lt.s32.totalorder %s40_s25, %s40_s25 }
  0x1a   :  { %p1430_p10 = scmp.ne.s32.totalorder %s40_s25, %s1429_s29  ;;  %p1435_p12 = scmp.lt.s32.totalorder %s1429_s29, %s1429_s29 }
  0x1c   :  { %p1436_p13 = por %p1435_p12, %p1434_p11 }
  0x1e   :  { %p1437_p0 = pnand %p1436_p13, %p1430_p10 }
  0x20   :  { %1440 = shalt.err (!%p1437_p0)
}
  0x21   :  { %45 = dma.hbm_to_vmem [thread:$0]  %s1623_s2, 1024, %s40_s25, [#allocation6], %s1468_s18, %s1468_s18, %s1469_s19  }
  0x22   :  { %1461 = dma.done.wait [#allocation3], 128  }
  0x23   :  { %1462 = vsyncadd [#allocation3], 4294967168 }
  0x24   :  { %1463 = dma.done.wait [#allocation6], 8192  }
  0x25   :  { %1464 = vsyncadd [#allocation6], 4294959104  ;;  %v1472_v0 = vmov 1   ;;  %v1473_v1 = vmov 2   ;;  %v1474_v2 = vmov 0.0   ;;  %vm1475_vm0 = vmmov 0  }
  0x26   :  { %1309 = vset.pattern.permute.xlu0 %v1472_v0  ;;  %1311 = vset.pattern.permute.xlu1 %v1473_v1  ;;  %v58_v3 = vld [vmem:[#allocation2] sm:$0xff]  ;;  %v1318_v5 = vld [vmem:[#allocation5 + $0x70] sm:$0xff]   ;;  %v1476_v7 = vmov 0   ;;  %v1477_v8 = vmov 3   ;;  %v1320_v9 = vld [vmem:[#allocation5 + $0x68] sm:$0xff]   ;;  %v1478_v11 = vmov 4   ;;  %v59_v25 = vlaneseq }
  0x27   :  { %1133 = vmatprep.subr.bf16.mxu0 %v1474_v2  ;;  %1153 = vmatprep.subr.bf16.mxu1 %v1474_v2  ;;  %v1317_v4 = vld [vmem:[#allocation5 + $0x78] sm:$0xff]   ;;  %v1321_v10 = vld [vmem:[#allocation5 + $0x30] sm:$0xff]   ;;  %v1479_v12 = vmov 5   ;;  %v1322_v13 = vld [vmem:[#allocation5 + $0x60] sm:$0xff]   ;;  %v1480_v15 = vmov 6  }
  0x28   :  { %1149 = vmatprep.mubr.msk.bf16.mxu0 %vm1475_vm0, %v1474_v2  ;;  %1169 = vmatprep.mubr.msk.bf16.mxu1 %vm1475_vm0, %v1474_v2  ;;  %v1319_v6 = vld [vmem:[#allocation5 + $0x38] sm:$0xff]   ;;  %v1323_v14 = vld [vmem:[#allocation5 + $0x28] sm:$0xff]   ;;  %v1325_v17 = vld [vmem:[#allocation5 + $0x20] sm:$0xff]   ;;  %v1540_v26 = vand.u32 127, %v59_v25  ;;  %v1481_v29 = vmov 1.0|1.0  }
  0x29   :  { %86 = vperm.xlu0 %1309, %v58_v3   ;;  %285 = vperm.xlu1 %1311, %v58_v3   ;;  %v1324_v16 = vld [vmem:[#allocation5 + $0x58] sm:$0xff]   ;;  %v1326_v18 = vld [vmem:[#allocation5 + $0x50] sm:$0xff]   ;;  %v1328_v20 = vld [vmem:[#allocation5 + $0x48] sm:$0xff]  }
  0x2a   :  { %1134 = vmatpush3.bf16.msra.mxu0 %v1317_v4  ;;  %1154 = vmatpush3.bf16.msra.mxu1 %v1319_v6  ;;  %v1327_v19 = vld [vmem:[#allocation5 + $0x18] sm:$0xff]   ;;  %v1329_v21 = vld [vmem:[#allocation5 + $0x10] sm:$0xff]   ;;  %v1330_v22 = vld [vmem:[#allocation5 + $0x40] sm:$0xff]  }
  0x2b   :  { %1135 = vmatprep.subr.bf16.mxu0 %v1474_v2  ;;  %1155 = vmatprep.subr.bf16.mxu1 %v1474_v2  ;;  %v1331_v23 = vld [vmem:[#allocation5 + $0x8] sm:$0xff]   ;;  %v1333_v24 = vld [vmem:[#allocation5] sm:$0xff]   ;;  %v1332_v28 = vld [vmem:[#allocation5 + $0xb8] sm:$0xff]  }
  0x2c   :  { %v1334_v30 = vld [vmem:[#allocation5 + $0xb0] sm:$0xff]   ;;  %v1335_v32 = vld [vmem:[#allocation5 + $0xf8] sm:$0xff]   ;;  %v1336_v33 = vld [vmem:[#allocation5 + $0xa8] sm:$0xff]  }
  0x2d   :  { %1310 = vset.pattern.permute.xlu0 %v1476_v7  ;;  %1312 = vset.pattern.permute.xlu1 %v1477_v8  ;;  %v1337_v34 = vld [vmem:[#allocation5 + $0xf0] sm:$0xff]   ;;  %v1338_v35 = vld [vmem:[#allocation5 + $0xa0] sm:$0xff]   ;;  %v1339_v36 = vld [vmem:[#allocation5 + $0xe8] sm:$0xff]  }
  0x2e   :  { %63 = vperm.xlu0 %1310, %v58_v3   ;;  %397 = vperm.xlu1 %1312, %v58_v3   ;;  %v1340_v37 = vld [vmem:[#allocation5 + $0x98] sm:$0xff]   ;;  %v1341_v38 = vld [vmem:[#allocation5 + $0xe0] sm:$0xff]   ;;  %v1342_v39 = vld [vmem:[#allocation5 + $0x90] sm:$0xff]  }
  0x2f   :  { %1136 = vmatpush3.bf16.msra.mxu0 %v1318_v5  ;;  %1156 = vmatpush3.bf16.msra.mxu1 %v1321_v10  ;;  %v1343_v40 = vld [vmem:[#allocation5 + $0xd8] sm:$0xff]   ;;  %v1344_v41 = vld [vmem:[#allocation5 + $0x88] sm:$0xff]   ;;  %v1345_v42 = vld [vmem:[#allocation5 + $0xd0] sm:$0xff]  }
  0x30   :  { %1137 = vmatprep.subr.bf16.mxu0 %v1474_v2  ;;  %1157 = vmatprep.subr.bf16.mxu1 %v1474_v2  ;;  %v1346_v44 = vld [vmem:[#allocation5 + $0x80] sm:$0xff]   ;;  %v1347_v45 = vld [vmem:[#allocation5 + $0xc8] sm:$0xff]   ;;  %v1348_v47 = vld [vmem:[#allocation5 + $0x138] sm:$0xff]  }
  0x31   :  { %v1349_v48 = vld [vmem:[#allocation5 + $0xc0] sm:$0xff]   ;;  %v1350_v49 = vld [vmem:[#allocation5 + $0x130] sm:$0xff]   ;;  %v1351_v50 = vld [vmem:[#allocation5 + $0x178] sm:$0xff]  }
  0x32   :  { %1313 = vset.pattern.permute.xlu1 %v1478_v11  ;;  %1314 = vset.pattern.permute.xlu0 %v1479_v12  ;;  %v1352_v51 = vld [vmem:[#allocation5 + $0x128] sm:$0xff]   ;;  %v1353_v52 = vld [vmem:[#allocation5 + $0x170] sm:$0xff]   ;;  %v1354_v53 = vld [vmem:[#allocation5 + $0x120] sm:$0xff]  }
  0x33   :  { %509 = vperm.xlu1 %1313, %v58_v3   ;;  %621 = vperm.xlu0 %1314, %v58_v3   ;;  %v1355_v54 = vld [vmem:[#allocation5 + $0x168] sm:$0xff]   ;;  %v1356_v55 = vld [vmem:[#allocation5 + $0x118] sm:$0xff]   ;;  %v1357_v56 = vld [vmem:[#allocation5 + $0x160] sm:$0xff]  }
  0x34   :  { %1138 = vmatpush3.bf16.msra.mxu0 %v1320_v9  ;;  %1158 = vmatpush3.bf16.msra.mxu1 %v1323_v14  ;;  %v1358_v57 = vld [vmem:[#allocation5 + $0x110] sm:$0xff]   ;;  %v1359_v58 = vld [vmem:[#allocation5 + $0x158] sm:$0xff]   ;;  %v1360_v59 = vld [vmem:[#allocation5 + $0x108] sm:$0xff]  }
  0x35   :  { %1139 = vmatprep.subr.bf16.mxu0 %v1474_v2  ;;  %1159 = vmatprep.subr.bf16.mxu1 %v1474_v2  ;;  %v1361_v60 = vld [vmem:[#allocation5 + $0x150] sm:$0xff]   ;;  %v1362_v62 = vld [vmem:[#allocation5 + $0x100] sm:$0xff]   ;;  %v1363_v63 = vld [vmem:[#allocation5 + $0x148] sm:$0xff]  }
  0x36   :  { %v1364_v1 = vld [vmem:[#allocation5 + $0x1b8] sm:$0xff]   ;;  %v1366_v4 = vld [vmem:[#allocation5 + $0x1b0] sm:$0xff]   ;;  %v1367_v5 = vld [vmem:[#allocation5 + $0x1a8] sm:$0xff]  }
  0x37   :  { %1315 = vset.pattern.permute.xlu1 %v1480_v15  ;;  %1316 = vset.pattern.permute.xlu0 %v1480_v15  ;;  %v1368_v6 = vld [vmem:[#allocation5 + $0x1a0] sm:$0xff]   ;;  %v1369_v7 = vld [vmem:[#allocation5 + $0x198] sm:$0xff]   ;;  %v1370_v8 = vld [vmem:[#allocation5 + $0x190] sm:$0xff]  }
  0x38   :  { %733 = vperm.xlu1 %1315, %v58_v3   ;;  %1140 = vmatpush3.bf16.msra.mxu0 %v1322_v13  ;;  %v1365_v3 = vld [vmem:[#allocation5 + $0x140] sm:$0xff]   ;;  %v1371_v9 = vld [vmem:[#allocation5 + $0x188] sm:$0xff]   ;;  %v1373_v12 = vld [vmem:[#allocation7 + $0x38] sm:$0xff]  }
  0x39   :  { %1141 = vmatprep.subr.bf16.mxu0 %v1474_v2  ;;  %1160 = vmatpush3.bf16.msra.mxu1 %v1325_v17  ;;  %v1372_v11 = vld [vmem:[#allocation5 + $0x180] sm:$0xff]   ;;  %v1374_v13 = vld [vmem:[#allocation7 + $0x30] sm:$0xff]   ;;  %v1375_v14 = vld [vmem:[#allocation7 + $0x28] sm:$0xff]  }
  0x3a   :  { %1161 = vmatprep.subr.bf16.mxu1 %v1474_v2  ;;  %v1376_v15 = vld [vmem:[#allocation7 + $0x20] sm:$0xff]   ;;  %v1378_v17 = vld [vmem:[#allocation7 + $0x10] sm:$0xff]  }
  0x3c   :  { %1142 = vmatpush3.bf16.msra.mxu0 %v1324_v16  ;;  %v1377_v16 = vld [vmem:[#allocation7 + $0x18] sm:$0xff]  }
  0x3d   :  { %1143 = vmatprep.subr.bf16.mxu0 %v1474_v2  ;;  %1162 = vmatpush3.bf16.msra.mxu1 %v1327_v19  ;;  %v1380_v19 = vld [vmem:[#allocation7] sm:$0xff]  }
  0x3e   :  { %1163 = vmatprep.subr.bf16.mxu1 %v1474_v2 }
  0x40   :  { %1144 = vmatpush3.bf16.msra.mxu0 %v1326_v18  ;;  %v1379_v18 = vld [vmem:[#allocation7 + $0x8] sm:$0xff]  }
  0x41   :  { %1145 = vmatprep.subr.bf16.mxu0 %v1474_v2  ;;  %1164 = vmatpush3.bf16.msra.mxu1 %v1329_v21 }
  0x42   :  { %1165 = vmatprep.subr.bf16.mxu1 %v1474_v2 }
  0x44   :  { %1146 = vmatpush3.bf16.msra.mxu0 %v1328_v20  ;;  %v845_v20 = vshrl.u32 %v59_v25, 7 }
  0x45   :  { %1147 = vmatprep.subr.bf16.mxu0 %v1474_v2  ;;  %1166 = vmatpush3.bf16.msra.mxu1 %v1331_v23 }
  0x46   :  { %1167 = vmatprep.subr.bf16.mxu1 %v1474_v2  ;;  %v869_v21 = vsub.s32 1, %v845_v20 }
  0x48   :  { %1148 = vmatpush3.bf16.msra.mxu0 %v1330_v22  ;;  %v61_v22 = vld [vmem:[%s1624_s3] sm:$0x3]  ;;  %s1482_s3 = smov [#allocation8]  }
  0x49   :  { %1173 = vmatprep.subr.bf16.mxu0 %v1474_v2  ;;  %1168 = vmatpush3.bf16.msra.mxu1 %v1333_v24  ;;  %v870_v23 = vrot.slane %v61_v22, %v869_v21  ;;  %s966_s5 = sshll.u32 %s1482_s3, 4  ;;  %s967_s5 = int_to_ptr.vmem [resolvable:$true] %s966_s5 }
  0x4a   :  { %1193 = vmatprep.subr.bf16.mxu1 %v1474_v2  ;;  %s1441_s6 = scalar_lea.vmem %s967_s5, 128  ;;  %p1446_p2 = scmp.lt.s32.totalorder %s967_s5, %s967_s5 }
  0x4b   :  { %p1442_p1 = scmp.ne.s32.totalorder %s967_s5, %s1441_s6  ;;  %p1447_p3 = scmp.lt.s32.totalorder %s1441_s6, %s1441_s6 }
  0x4d   :  { %p1448_p4 = por %p1447_p3, %p1446_p2 }
  0x4f   :  { %p1449_p5 = pnand %p1448_p4, %p1442_p1 }
  0xa4   :  { %v87_v27 = vpop.permute.xlu0 %86  ;;  %v286_v43 = vpop.permute.xlu1 %285 }
  0xa5   :  { %vm88_vm1 = vcmp.eq.s32.totalorder %v87_v27, %v1540_v26  ;;  %vm287_vm5 = vcmp.eq.s32.totalorder %v286_v43, %v1540_v26 }
  0xa6   :  { %vm986_vm2 = vmpackc.low %vm88_vm1, %vm88_vm1 }
  0xa7   :  { %1150 = vmatmul.mubr.msk.bf16.vlgmr.msra.gmra.mxu0 %vm986_vm2, %v1481_v29  ;;  %vm1007_vm6 = vmpackc.low %vm287_vm5, %vm287_vm5 }
  0xa8   :  { %1174 = vmatpush3.bf16.msra.mxu0 %v1332_v28  ;;  %1189 = vmatprep.mubr.msk.bf16.mxu0 %vm1475_vm0, %v1474_v2 }
  0xa9   :  { %v64_v31 = vpop.permute.xlu0 %63  ;;  %1175 = vmatprep.subr.bf16.mxu0 %v1474_v2  ;;  %v398_v46 = vpop.permute.xlu1 %397 }
  0xaa   :  { %vm65_vm3 = vcmp.eq.s32.totalorder %v64_v31, %v1540_v26  ;;  %vm399_vm7 = vcmp.eq.s32.totalorder %v398_v46, %v1540_v26 }
  0xab   :  { %vm996_vm4 = vmpackc.low %vm65_vm3, %vm65_vm3 }
  0xac   :  { %1176 = vmatpush3.bf16.msra.mxu0 %v1334_v30  ;;  %1170 = vmatmul.mubr.msk.bf16.vlgmr.msra.gmra.mxu1 %vm996_vm4, %v1481_v29  ;;  %vm1018_vm8 = vmpackc.low %vm399_vm7, %vm399_vm7 }
  0xad   :  { %1194 = vmatpush3.bf16.msra.mxu1 %v1335_v32  ;;  %1177 = vmatprep.subr.bf16.mxu0 %v1474_v2 }
  0xae   :  { %1195 = vmatprep.subr.bf16.mxu1 %v1474_v2  ;;  %1209 = vmatprep.mubr.msk.bf16.mxu1 %vm1475_vm0, %v1474_v2  ;;  %v510_v61 = vpop.permute.xlu1 %509  ;;  %v622_v0 = vpop.permute.xlu0 %621 }
  0xaf   :  { %vm511_vm9 = vcmp.eq.s32.totalorder %v510_v61, %v1540_v26  ;;  %vm623_vm11 = vcmp.eq.s32.totalorder %v622_v0, %v1540_v26 }
  0xb0   :  { %1178 = vmatpush3.bf16.msra.mxu0 %v1336_v33  ;;  %vm1029_vm10 = vmpackc.low %vm511_vm9, %vm511_vm9 }
  0xb1   :  { %1196 = vmatpush3.bf16.msra.mxu1 %v1337_v34  ;;  %1179 = vmatprep.subr.bf16.mxu0 %v1474_v2  ;;  %vm1040_vm12 = vmpackc.low %vm623_vm11, %vm623_vm11 }
  0xb2   :  { %1197 = vmatprep.subr.bf16.mxu1 %v1474_v2 }
  0xb3   :  { %v734_v10 = vpop.permute.xlu1 %733 }
  0xb4   :  { %1180 = vmatpush3.bf16.msra.mxu0 %v1338_v35  ;;  %vm735_vm13 = vcmp.eq.s32.totalorder %v734_v10, %v1540_v26 }
  0xb5   :  { %1198 = vmatpush3.bf16.msra.mxu1 %v1339_v36  ;;  %1181 = vmatprep.subr.bf16.mxu0 %v1474_v2  ;;  %vm1051_vm14 = vmpackc.low %vm735_vm13, %vm735_vm13 }
  0xb6   :  { %1199 = vmatprep.subr.bf16.mxu1 %v1474_v2 }
  0xb8   :  { %1182 = vmatpush3.bf16.msra.mxu0 %v1340_v37 }
  0xb9   :  { %1200 = vmatpush3.bf16.msra.mxu1 %v1341_v38  ;;  %1183 = vmatprep.subr.bf16.mxu0 %v1474_v2 }
  0xba   :  { %1201 = vmatprep.subr.bf16.mxu1 %v1474_v2 }
  0xbc   :  { %1184 = vmatpush3.bf16.msra.mxu0 %v1342_v39 }
  0xbd   :  { %1202 = vmatpush3.bf16.msra.mxu1 %v1343_v40  ;;  %1185 = vmatprep.subr.bf16.mxu0 %v1474_v2 }
  0xbe   :  { %1203 = vmatprep.subr.bf16.mxu1 %v1474_v2 }
  0xc0   :  { %1186 = vmatpush3.bf16.msra.mxu0 %v1344_v41 }
  0xc1   :  { %1204 = vmatpush3.bf16.msra.mxu1 %v1345_v42  ;;  %1187 = vmatprep.subr.bf16.mxu0 %v1474_v2 }
  0xc2   :  { %1205 = vmatprep.subr.bf16.mxu1 %v1474_v2 }
  0xc4   :  { %1188 = vmatpush3.bf16.msra.mxu0 %v1346_v44 }
  0xc5   :  { %1206 = vmatpush3.bf16.msra.mxu1 %v1347_v45  ;;  %1213 = vmatprep.subr.bf16.mxu0 %v1474_v2 }
  0xc6   :  { %1207 = vmatprep.subr.bf16.mxu1 %v1474_v2 }
  0xc7   :  { %1190 = vmatmul.mubr.msk.bf16.vlgmr.msra.gmra.mxu0 %vm1007_vm6, %v1481_v29 }
  0xc8   :  { %1214 = vmatpush3.bf16.msra.mxu0 %v1348_v47  ;;  %1229 = vmatprep.mubr.msk.bf16.mxu0 %vm1475_vm0, %v1474_v2 }
  0xc9   :  { %1208 = vmatpush3.bf16.msra.mxu1 %v1349_v48  ;;  %1215 = vmatprep.subr.bf16.mxu0 %v1474_v2 }
  0xca   :  { %1233 = vmatprep.subr.bf16.mxu1 %v1474_v2 }
  0xcc   :  { %1210 = vmatmul.mubr.msk.bf16.vlgmr.msra.gmra.mxu1 %vm1018_vm8, %v1481_v29  ;;  %1216 = vmatpush3.bf16.msra.mxu0 %v1350_v49 }
  0xcd   :  { %1234 = vmatpush3.bf16.msra.mxu1 %v1351_v50  ;;  %1217 = vmatprep.subr.bf16.mxu0 %v1474_v2  ;;  %v846_v50 = vsub.s32 0, %v845_v20 }
  0xce   :  { %1235 = vmatprep.subr.bf16.mxu1 %v1474_v2  ;;  %1249 = vmatprep.mubr.msk.bf16.mxu1 %vm1475_vm0, %v1474_v2 }
  0xd0   :  { %1218 = vmatpush3.bf16.msra.mxu0 %v1352_v51 }
  0xd1   :  { %1236 = vmatpush3.bf16.msra.mxu1 %v1353_v52  ;;  %1219 = vmatprep.subr.bf16.mxu0 %v1474_v2 }
  0xd2   :  { %1237 = vmatprep.subr.bf16.mxu1 %v1474_v2 }
  0xd4   :  { %1220 = vmatpush3.bf16.msra.mxu0 %v1354_v53  ;;  %v847_v53 = vrot.slane %v61_v22, %v846_v50 }
  0xd5   :  { %1238 = vmatpush3.bf16.msra.mxu1 %v1355_v54  ;;  %1221 = vmatprep.subr.bf16.mxu0 %v1474_v2 }
  0xd6   :  { %1239 = vmatprep.subr.bf16.mxu1 %v1474_v2 }
  0xd8   :  { %1222 = vmatpush3.bf16.msra.mxu0 %v1356_v55 }
  0xd9   :  { %1240 = vmatpush3.bf16.msra.mxu1 %v1357_v56  ;;  %1223 = vmatprep.subr.bf16.mxu0 %v1474_v2 }
  0xda   :  { %1241 = vmatprep.subr.bf16.mxu1 %v1474_v2 }
  0xdc   :  { %1224 = vmatpush3.bf16.msra.mxu0 %v1358_v57 }
  0xdd   :  { %1242 = vmatpush3.bf16.msra.mxu1 %v1359_v58  ;;  %1225 = vmatprep.subr.bf16.mxu0 %v1474_v2 }
  0xde   :  { %1243 = vmatprep.subr.bf16.mxu1 %v1474_v2 }
  0xe0   :  { %1226 = vmatpush3.bf16.msra.mxu0 %v1360_v59 }
  0xe1   :  { %1244 = vmatpush3.bf16.msra.mxu1 %v1361_v60  ;;  %1227 = vmatprep.subr.bf16.mxu0 %v1474_v2 }
  0xe2   :  { %1245 = vmatprep.subr.bf16.mxu1 %v1474_v2 }
  0xe4   :  { %1228 = vmatpush3.bf16.msra.mxu0 %v1362_v62 }
  0xe5   :  { %1246 = vmatpush3.bf16.msra.mxu1 %v1363_v63  ;;  %1253 = vmatprep.subr.bf16.mxu0 %v1474_v2 }
  0xe6   :  { %1247 = vmatprep.subr.bf16.mxu1 %v1474_v2 }
  0xe7   :  { %1230 = vmatmul.mubr.msk.bf16.vlgmr.msra.gmra.mxu0 %vm1029_vm10, %v1481_v29 }
  0xe8   :  { %1254 = vmatpush3.bf16.msra.mxu0 %v1364_v1  ;;  %1269 = vmatprep.mubr.msk.bf16.mxu0 %vm1475_vm0, %v1474_v2 }
  0xe9   :  { %1248 = vmatpush3.bf16.msra.mxu1 %v1365_v3  ;;  %1255 = vmatprep.subr.bf16.mxu0 %v1474_v2 }
  0xea   :  { %1273 = vmatprep.subr.bf16.mxu1 %v1474_v2 }
  0xec   :  { %1250 = vmatmul.mubr.msk.bf16.vlgmr.msra.gmra.mxu1 %vm1040_vm12, %v1481_v29  ;;  %1256 = vmatpush3.bf16.msra.mxu0 %v1366_v4 }
  0xed   :  { %1257 = vmatprep.subr.bf16.mxu0 %v1474_v2  ;;  %1289 = vmatprep.mubr.msk.bf16.mxu1 %vm1475_vm0, %v1474_v2 }
  0xee   :  { %1274 = vmatpush3.bf16.msra.mxu1 %v1373_v12 }
  0xef   :  { %1275 = vmatprep.subr.bf16.mxu1 %v1474_v2 }
  0xf0   :  { %1258 = vmatpush3.bf16.msra.mxu0 %v1367_v5 }
  0xf1   :  { %1259 = vmatprep.subr.bf16.mxu0 %v1474_v2 }
  0xf2   :  { %1276 = vmatpush3.bf16.msra.mxu1 %v1374_v13 }
  0xf3   :  { %1277 = vmatprep.subr.bf16.mxu1 %v1474_v2 }
  0xf4   :  { %1260 = vmatpush3.bf16.msra.mxu0 %v1368_v6 }
  0xf5   :  { %1261 = vmatprep.subr.bf16.mxu0 %v1474_v2 }
  0xf6   :  { %1278 = vmatpush3.bf16.msra.mxu1 %v1375_v14 }
  0xf7   :  { %1279 = vmatprep.subr.bf16.mxu1 %v1474_v2 }
  0xf8   :  { %1262 = vmatpush3.bf16.msra.mxu0 %v1369_v7 }
  0xf9   :  { %1263 = vmatprep.subr.bf16.mxu0 %v1474_v2 }
  0xfa   :  { %1280 = vmatpush3.bf16.msra.mxu1 %v1376_v15 }
  0xfb   :  { %1281 = vmatprep.subr.bf16.mxu1 %v1474_v2 }
  0xfc   :  { %1264 = vmatpush3.bf16.msra.mxu0 %v1370_v8 }
  0xfd   :  { %1265 = vmatprep.subr.bf16.mxu0 %v1474_v2 }
  0xfe   :  { %1282 = vmatpush3.bf16.msra.mxu1 %v1377_v16 }
  0xff   :  { %1283 = vmatprep.subr.bf16.mxu1 %v1474_v2 }
 0x100   :  { %1266 = vmatpush3.bf16.msra.mxu0 %v1371_v9 }
 0x101   :  { %1267 = vmatprep.subr.bf16.mxu0 %v1474_v2 }
 0x102   :  { %1284 = vmatpush3.bf16.msra.mxu1 %v1378_v17 }
 0x103   :  { %1285 = vmatprep.subr.bf16.mxu1 %v1474_v2 }
 0x104   :  { %1268 = vmatpush3.bf16.msra.mxu0 %v1372_v11 }
 0x106   :  { %1286 = vmatpush3.bf16.msra.mxu1 %v1379_v18 }
 0x107   :  { %1270 = vmatmul.mubr.msk.bf16.vlgmr.msra.gmra.mxu0 %vm1051_vm14, %v1481_v29  ;;  %1287 = vmatprep.subr.bf16.mxu1 %v1474_v2 }
 0x10a   :  { %1288 = vmatpush3.bf16.msra.mxu1 %v1380_v19 }
 0x167   :  { %v190_v24 = vpop.f32.mrf.mxu0 }
 0x169   :  { %v1151_v26 = vpop.f32.mrf.mxu0 }
 0x16b   :  { %v193_v27 = vpop.f32.mrf.mxu0 }
 0x16c   :  { %v278_v28 = vpop.f32.mrf.mxu1 }
 0x16d   :  { %v279_v29 = vadd.f32 %v278_v28, %v190_v24  ;;  %v1152_v30 = vpop.f32.mrf.mxu0 }
 0x16e   :  { %v1171_v31 = vpop.f32.mrf.mxu1 }
 0x170   :  { %v281_v32 = vpop.f32.mrf.mxu1 }
 0x172   :  { %v1172_v33 = vpop.f32.mrf.mxu1 }
 0x187   :  { %v389_v2 = vpop.f32.mrf.mxu0 }
 0x188   :  { %v395_v48 = vadd.f32 %v389_v2, %v279_v29 }
 0x189   :  { %v1191_v34 = vpop.f32.mrf.mxu0 }
 0x18b   :  { %v392_v35 = vpop.f32.mrf.mxu0 }
 0x18c   :  { %v501_v36 = vpop.f32.mrf.mxu1 }
 0x18d   :  { %v1192_v25 = vpop.f32.mrf.mxu0  ;;  %v507_v49 = vadd.f32 %v501_v36, %v395_v48 }
 0x18e   :  { %v1211_v37 = vpop.f32.mrf.mxu1 }
 0x190   :  { %v504_v38 = vpop.f32.mrf.mxu1 }
 0x192   :  { %v1212_v39 = vpop.f32.mrf.mxu1 }
 0x1a7   :  { %v613_v40 = vpop.f32.mrf.mxu0 }
 0x1a8   :  { %v619_v51 = vadd.f32 %v613_v40, %v507_v49 }
 0x1a9   :  { %v1231_v41 = vpop.f32.mrf.mxu0 }
 0x1ab   :  { %v616_v42 = vpop.f32.mrf.mxu0 }
 0x1ac   :  { %v725_v43 = vpop.f32.mrf.mxu1 }
 0x1ad   :  { %v1232_v44 = vpop.f32.mrf.mxu0  ;;  %v731_v52 = vadd.f32 %v725_v43, %v619_v51 }
 0x1ae   :  { %v1251_v45 = vpop.f32.mrf.mxu1 }
 0x1b0   :  { %v728_v46 = vpop.f32.mrf.mxu1 }
 0x1b2   :  { %v1252_v47 = vpop.f32.mrf.mxu1 }
 0x1c7   :  { %v837_v54 = vpop.f32.mrf.mxu0 }
 0x1c8   :  { %v843_v55 = vadd.f32 %v837_v54, %v731_v52 }
 0x1c9   :  { %v1271_v56 = vpop.f32.mrf.mxu0 }
 0x1ca   :  { %v848_v57 = vadd.f32 %v847_v53, %v843_v55 }
 0x1cb   :  { %v840_v58 = vpop.f32.mrf.mxu0 }
 0x1cc   :  { %v849_v59 = vmax.f32 %v848_v57, 0.0 }
 0x1cd   :  { %v1272_v60 = vpop.f32.mrf.mxu0 }
 0x1ce   :  { %v850_v61 = vpack.c.bf16 %v849_v59, %v849_v59 }
 0x1d0   :  { %1290 = vmatmul.mubr.bf16.vlgmr.msra.gmra.mxu1 %v850_v61 }
 0x290   :  { %v953_v62 = vpop.f32.mrf.mxu1 }
 0x291   :  { %v954_v63 = vadd.f32 %v953_v62, %v870_v23 }
 0x292   :  { %v1291_v0 = vpop.f32.mrf.mxu1 }
 0x293   :  { %959 = vst [vmem:[#allocation8] sm:$0xff] %v954_v63 }
 0x294   :  { %v956_v1 = vpop.f32.mrf.mxu1 }
 0x295   :  { %1452 = shalt.err (!%p1449_p5)
}
 0x296   :  { %969 = dma.vmem_to_hbm [thread:$0]  %s967_s5, 128, %s1625_s4, [#allocation4]   ;;  %v1292_v3 = vpop.f32.mrf.mxu1 }
 0x297   :  { %1465 = dma.done.wait [#allocation4], 128  }
 0x298   :  { %1466 = vsyncadd [#allocation4], 4294967168 }
 0x299   :  { %973 = vsyncpa [#allocation3], 1 }
 0x29a   :  { %974 = vsyncpa [#allocation6], 1 }
 0x29b   :  { %975 = vsyncpa [#allocation4], 1 }

</bundles_post_ra>
